<compile_context>
chip_gen: v7x
topology: tpu7x:2x2x1
jax: 0.10.0
libtpu: 0.0.40
codegen_flags: <defaults>
</compile_context>

<pallas_src>
import jax
import jax.numpy as jnp
from jax.experimental import pallas as pl
from jax.experimental.pallas import tpu as pltpu


# ----------------------------------------------------------------------------
# Kernels
# ----------------------------------------------------------------------------

def _make_fused_kernel(fold_shifts):
    """Single-pass kernel: full (bt, Ld, Cd) slab per step."""
    fold_shifts = tuple(int(s) for s in fold_shifts)

    def kernel(x_ref, aw_ref, gw_ref, gb_ref, o_ref):
        x = x_ref[...]                                        # (bt, Ld, Cd) native dtype
        # Per-lane sum over the folded sequence axis, f32 accumulation only.
        s = jnp.sum(x, axis=1, dtype=jnp.float32)             # (bt, Cd)
        # All-reduce across the k lane groups (recursive doubling on the XLU).
        # After the rolls every lane g*C + c holds the full sum over L of
        # channel c, already replicated across the k groups.
        for shift in fold_shifts:
            s = s + pltpu.roll(s, shift, axis=1)
        s = s[:, None, :]                                     # (bt, 1, Cd)

        aw = aw_ref[...][:, None, :]                          # (1, 1, Cd) = alpha_w / L (tiled)
        gw = gw_ref[...][:, None, :]                          # (1, 1, Cd) = (1-alpha)*beta_w / L
        gb = gb_ref[...][:, None, :]                          # (1, 1, Cd) = beta_b

        a = (s * aw).astype(x.dtype)                          # adaptive shift
        g = jax.nn.sigmoid(s * gw + gb).astype(x.dtype)       # sigmoid gate
        o_ref[...] = ((x - a) * g).astype(o_ref.dtype)

    return kernel


def _make_sum_kernel(Ld, lt):
    """Fallback pass 1: accumulate per-(b, lane) sums over L tiles."""
    ragged = (Ld % lt) != 0

    def kernel(x_ref, s_ref):
        l = pl.program_id(1)

        @pl.when(l == 0)
        def _():
            s_ref[...] = jnp.zeros_like(s_ref)

        x = x_ref[...]                                        # (1, lt, Cd)
        if ragged:
            # Mask rows past the end of L on the ragged tail block so stale
            # VMEM never pollutes the accumulator.
            row = l * lt + jax.lax.broadcasted_iota(jnp.int32, (1, lt, 1), 1)
            x = jnp.where(row < Ld, x, jnp.zeros_like(x))
        s_ref[...] += jnp.sum(x, axis=1, keepdims=True, dtype=jnp.float32)

    return kernel


def _apply_kernel(x_ref, a_ref, g_ref, o_ref):
    """Fallback pass 2: streaming (x - a) * gate."""
    x = x_ref[...]                                            # (1, lt, Cd)
    a = a_ref[...].astype(x.dtype)                            # (1, 1, Cd)
    g = g_ref[...].astype(x.dtype)                            # (1, 1, Cd)
    o_ref[...] = ((x - a) * g).astype(o_ref.dtype)


# ----------------------------------------------------------------------------
# Tiling heuristics
# ----------------------------------------------------------------------------

def _hw_defaults():
    """Generation-aware block-size / grid heuristics (perf only, never correctness)."""
    target, min_steps = 2 << 20, 8
    try:
        kind = jax.devices()[0].device_kind.lower()
    except Exception:
        kind = ""
    if ("v5 lite" in kind) or ("v5e" in kind):
        target, min_steps = 2 << 20, 4      # 1 TC, 16 MiB scoped-VMEM default
    elif "v6" in kind:
        target, min_steps = 2 << 20, 4      # 1 TC, 2 MiB blocks already ~roofline
    elif ("v7" in kind) or ("tpu7" in kind):
        target, min_steps = 4 << 20, 8      # 2 TCs, ~3.2 TB/s HBM: bigger blocks, even split
    return target, min_steps


def _choose_fold(L, C):
    """Lane-group count k so the lane dim becomes k*C (dense up to 128), L % k == 0."""
    if C >= 128 or (128 % C) != 0:
        return 1
    k = 128 // C
    while k > 1 and (L % k) != 0:
        k //= 2
    return k


def _choose_bt(B, per_batch_bytes, *, target_bytes, min_bytes, min_steps):
    """Batches per grid step: fill the target block, keep enough steps for
    pipelining / megacore, prefer an even step count."""
    per = max(1, int(per_batch_bytes))
    bt = int(max(1, min(B, target_bytes // per)))
    if pl.cdiv(B, bt) < min_steps:
        bt_steps = max(1, B // min_steps)                     # enough steps ...
        bt_floor = max(1, min(B, -(-min_bytes // per)))       # ... but blocks >= min_bytes
        bt = min(bt, max(bt_steps, bt_floor))
    steps = pl.cdiv(B, bt)
    if steps > 1 and steps % 2 == 1:                          # balance the two v7x TCs
        for alt in range(bt - 1, max(0, bt - 65), -1):
            if pl.cdiv(B, alt) % 2 == 0 and alt * per >= min_bytes:
                bt = alt
                break
    return int(bt)


def _compiler_params(block_bytes, semantics):
    # ~2 pipeline buffers each for the streamed input and the output, plus
    # slack for the small resident tiles / elementwise temporaries.
    need = 6 * int(block_bytes) + (2 << 20)
    return pltpu.CompilerParams(
        dimension_semantics=semantics,
        vmem_limit_bytes=int(min(32 << 20, max(16 << 20, need))),
    )


# ----------------------------------------------------------------------------
# Forward wrapper
# ----------------------------------------------------------------------------

def dain_forward(x, alpha_w, beta_w, beta_b, *,
                 target_block_bytes=None,
                 fused_cap_bytes=4 << 20,
                 min_block_bytes=512 << 10,
                 min_steps=None):
    """x: (B, L, C); alpha_w/beta_w/beta_b: (C,). Returns (B, L, C)."""
    B, L, C = x.shape
    tgt_default, steps_default = _hw_defaults()
    target = int(target_block_bytes) if target_block_bytes else tgt_default
    min_steps = int(min_steps) if min_steps else steps_default

    # Lane-dense view: (B, L, C) -> (B, L//k, k*C). Free, contiguous reshape.
    k = _choose_fold(L, C)
    Ld, Cd = L // k, k * C
    xr = x.reshape(B, Ld, Cd)
    itemsize = jnp.dtype(x.dtype).itemsize
    per_batch = Ld * Cd * itemsize

    f32 = jnp.float32
    inv_L = 1.0 / L
    aw = alpha_w.astype(f32).reshape(1, C)
    a_w = aw * inv_L                                          # applied to sums -> alpha * mean
    g_w = (1.0 - aw) * beta_w.astype(f32).reshape(1, C) * inv_L
    g_b = beta_b.astype(f32).reshape(1, C)

    # ---------------- fused single-pass path ----------------
    if per_batch <= int(fused_cap_bytes):
        aw_t = jnp.tile(a_w, (1, k))                          # (1, Cd), lane-group tiled
        gw_t = jnp.tile(g_w, (1, k))
        gb_t = jnp.tile(g_b, (1, k))
        bt = _choose_bt(B, per_batch, target_bytes=target,
                        min_bytes=min_block_bytes, min_steps=min_steps)
        shifts = [C << i for i in range(k.bit_length() - 1)]  # C, 2C, ..., (k/2)*C
        out = pl.pallas_call(
            _make_fused_kernel(shifts),
            out_shape=jax.ShapeDtypeStruct((B, Ld, Cd), x.dtype),
            grid=(pl.cdiv(B, bt),),
            in_specs=[
                pl.BlockSpec((bt, Ld, Cd), lambda b: (b, 0, 0)),   # x slab
                pl.BlockSpec((1, Cd), lambda b: (0, 0)),           # alpha_w / L (tiled)
                pl.BlockSpec((1, Cd), lambda b: (0, 0)),           # fused gate weight / L
                pl.BlockSpec((1, Cd), lambda b: (0, 0)),           # beta bias
            ],
            out_specs=pl.BlockSpec((bt, Ld, Cd), lambda b: (b, 0, 0)),
            compiler_params=_compiler_params(bt * per_batch, ("parallel",)),
        )(xr, aw_t, gw_t, gb_t)
        return out.reshape(B, L, C)

    # ---------------- two-pass L-tiled fallback ----------------
    # A single batch slab exceeds the fused VMEM budget: (1) accumulate per-
    # (b, lane) sums over L tiles, (2) tiny gate math in XLA, (3) stream apply.
    row_bytes = Cd * itemsize
    lt = max(8, (target // max(1, row_bytes)) // 8 * 8)       # multiple of 8 sublanes
    lt = min(lt, Ld)                                          # or the full L dim
    n_l = pl.cdiv(Ld, lt)
    block_bytes = lt * row_bytes

    sums = pl.pallas_call(
        _make_sum_kernel(Ld, lt),
        out_shape=jax.ShapeDtypeStruct((B, 1, Cd), jnp.float32),
        grid=(B, n_l),
        in_specs=[pl.BlockSpec((1, lt, Cd), lambda b, l: (b, l, 0))],
        out_specs=pl.BlockSpec((1, 1, Cd), lambda b, l: (b, 0, 0)),
        compiler_params=_compiler_params(block_bytes, ("parallel", "arbitrary")),
    )(xr)

    tot = sums.reshape(B, k, C).sum(axis=1)                   # (B, C) sums over L (fold groups)
    a = tot * a_w                                             # mean * alpha_w
    gate = jax.nn.sigmoid(tot * g_w + g_b)                    # sigmoid(m2 * beta_w + beta_b)
    a_t = jnp.tile(a, (1, k)).reshape(B, 1, Cd)
    g_t = jnp.tile(gate, (1, k)).reshape(B, 1, Cd)

    out = pl.pallas_call(
        _apply_kernel,
        out_shape=jax.ShapeDtypeStruct((B, Ld, Cd), x.dtype),
        grid=(B, n_l),
        in_specs=[
            pl.BlockSpec((1, lt, Cd), lambda b, l: (b, l, 0)),
            pl.BlockSpec((1, 1, Cd), lambda b, l: (b, 0, 0)),
            pl.BlockSpec((1, 1, Cd), lambda b, l: (b, 0, 0)),
        ],
        out_specs=pl.BlockSpec((1, lt, Cd), lambda b, l: (b, l, 0)),
        compiler_params=_compiler_params(block_bytes, ("parallel", "parallel")),
    )(xr, a_t, g_t)
    return out.reshape(B, L, C)


# ----------------------------------------------------------------------------
# Pure-JAX reference (non-fused, mirrors the PyTorch module)
# ----------------------------------------------------------------------------

def dain_reference(x, alpha_w, beta_w, beta_b):
    xf = x.astype(jnp.float32)
    m1 = jnp.mean(xf, axis=1, keepdims=True)                  # (B, 1, C)
    a = m1 * alpha_w[None, None, :]
    m2 = jnp.mean(xf - a, axis=1, keepdims=True)
    gate = jax.nn.sigmoid(m2 * beta_w[None, None, :] + beta_b[None, None, :])
    return ((xf - a) * gate).astype(x.dtype)


# ----------------------------------------------------------------------------
# Tests
# ----------------------------------------------------------------------------

if __name__ == "__main__":
    key = jax.random.PRNGKey(0)
    kbw, kbb, kaw, k1, k2, k3, k4, k5 = jax.random.split(key, 8)

    C = 32
    # DAINLayer init: alpha weight = ones, beta weight ~ N(0,1), beta bias ~ U(-1,1).
    alpha_ones = jnp.ones((C,), jnp.float32)
    alpha_rand = 1.0 + 0.3 * jax.random.normal(kaw, (C,), jnp.float32)   # post-training-like
    beta_w = jax.random.normal(kbw, (C,), jnp.float32)
    beta_b = jax.random.uniform(kbb, (C,), jnp.float32, minval=-1.0, maxval=1.0)

    def check(tag, x, aw, bw, bb, atol, rtol, **kw):
        out = jax.block_until_ready(dain_forward(x, aw, bw, bb, **kw))
        ref = dain_reference(x, aw, bw, bb)
        assert out.shape == x.shape, tag
        ok = jnp.allclose(out.astype(jnp.float32), ref.astype(jnp.float32),
                          atol=atol, rtol=rtol)
        assert bool(ok), tag

    # 1) Basic small shape (fused path, lane-dense fold k=4, single step).
    check("basic", jax.random.normal(k1, (2, 8, C), jnp.float32),
          alpha_ones, beta_w, beta_b, 1e-5, 1e-5)

    # 2) Multi-step grid with a ragged batch tail (B=5, bt=2 -> 3 blocks) and
    #    non-trivial alpha so the fused gate algebra is exercised.
    check("ragged_batch", jax.random.normal(k2, (5, 512, C), jnp.float32),
          alpha_rand, beta_w, beta_b, 1e-5, 1e-5, target_block_bytes=128 * 1024)

    # 3) bf16 inputs (f32 accumulation inside the kernel).
    check("bf16", jax.random.normal(k3, (4, 256, C), jnp.bfloat16),
          alpha_ones, beta_w, beta_b, 1e-1, 5e-2)

    # 4) Two-pass L-tiled fallback (forced small caps) with a ragged, masked L tail.
    check("two_pass", jax.random.normal(k4, (3, 288, C), jnp.float32),
          alpha_rand, beta_w, beta_b, 1e-5, 1e-5,
          target_block_bytes=8 * 1024, fused_cap_bytes=16 * 1024)

    # 5) C that does not divide 128 (k=1 lane-masked fallback path).
    C2 = 24
    check("lane_sparse", jax.random.normal(k5, (2, 16, C2), jnp.float32),
          alpha_ones[:C2], beta_w[:C2], beta_b[:C2], 1e-5, 1e-5)

    print("KERNEL_OK")
</pallas_src>

<mosaic_0001>
module attributes {stable_mosaic.version = 11 : i64} {
  func.func @kernel(%arg0: i32, %arg1: memref<2x2x128xf32, #tpu.memory_space<vmem>>, %arg2: memref<1x128xf32, #tpu.memory_space<vmem>>, %arg3: memref<1x128xf32, #tpu.memory_space<vmem>>, %arg4: memref<1x128xf32, #tpu.memory_space<vmem>>, %arg5: memref<2x2x128xf32, #tpu.memory_space<vmem>>) attributes {dimension_semantics = [#tpu.dimension_semantics<parallel>], iteration_bounds = array<i64: 1>, scalar_prefetch = 0 : i64, scratch_operands = 0 : i64, tpu.core_type = #tpu.core_type<tc>, window_params = [{transform_indices = @transform_0, window_bounds = array<i64: 2, 2, 128>}, {pipeline_mode = #tpu.pipeline_mode<synchronous>, transform_indices = @transform_1, window_bounds = array<i64: 1, 128>}, {pipeline_mode = #tpu.pipeline_mode<synchronous>, transform_indices = @transform_2, window_bounds = array<i64: 1, 128>}, {pipeline_mode = #tpu.pipeline_mode<synchronous>, transform_indices = @transform_3, window_bounds = array<i64: 1, 128>}, {transform_indices = @transform_4, window_bounds = array<i64: 2, 2, 128>}]} {
    %c0 = arith.constant 0 : index
    %c0_0 = arith.constant 0 : index
    %c0_1 = arith.constant 0 : index
    %0 = vector.load %arg1[%c0, %c0_0, %c0_1] : memref<2x2x128xf32, #tpu.memory_space<vmem>>, vector<2x2x128xf32>
    %cst = arith.constant dense<0.000000e+00> : vector<2x128xf32>
    %1 = vector.multi_reduction <add>, %0, %cst [1] : vector<2x2x128xf32> to vector<2x128xf32>
    %c32_i32 = arith.constant 32 : i32
    %2 = tpu.dynamic_rotate %1 by %c32_i32 dim 1 : vector<2x128xf32>, i32 -> vector<2x128xf32>
    %3 = arith.addf %1, %2 : vector<2x128xf32>
    %c64_i32 = arith.constant 64 : i32
    %4 = tpu.dynamic_rotate %3 by %c64_i32 dim 1 : vector<2x128xf32>, i32 -> vector<2x128xf32>
    %5 = arith.addf %3, %4 : vector<2x128xf32>
    %6 = vector.shape_cast %5 : vector<2x128xf32> to vector<2x1x128xf32>
    %c0_2 = arith.constant 0 : index
    %c0_3 = arith.constant 0 : index
    %7 = vector.load %arg2[%c0_2, %c0_3] : memref<1x128xf32, #tpu.memory_space<vmem>>, vector<1x128xf32>
    %8 = vector.shape_cast %7 : vector<1x128xf32> to vector<1x1x128xf32>
    %c0_4 = arith.constant 0 : index
    %c0_5 = arith.constant 0 : index
    %9 = vector.load %arg3[%c0_4, %c0_5] : memref<1x128xf32, #tpu.memory_space<vmem>>, vector<1x128xf32>
    %10 = vector.shape_cast %9 : vector<1x128xf32> to vector<1x1x128xf32>
    %c0_6 = arith.constant 0 : index
    %c0_7 = arith.constant 0 : index
    %11 = vector.load %arg4[%c0_6, %c0_7] : memref<1x128xf32, #tpu.memory_space<vmem>>, vector<1x128xf32>
    %12 = vector.shape_cast %11 : vector<1x128xf32> to vector<1x1x128xf32>
    %13 = vector.broadcast %8 : vector<1x1x128xf32> to vector<2x1x128xf32>
    %14 = arith.mulf %6, %13 : vector<2x1x128xf32>
    %15 = vector.broadcast %10 : vector<1x1x128xf32> to vector<2x1x128xf32>
    %16 = arith.mulf %6, %15 : vector<2x1x128xf32>
    %17 = vector.broadcast %12 : vector<1x1x128xf32> to vector<2x1x128xf32>
    %18 = arith.addf %16, %17 : vector<2x1x128xf32>
    %19 = arith.negf %18 : vector<2x1x128xf32>
    %20 = math.exp %19 : vector<2x1x128xf32>
    %cst_8 = arith.constant 1.000000e+00 : f32
    %21 = vector.broadcast %cst_8 : f32 to vector<2x1x128xf32>
    %22 = arith.addf %21, %20 : vector<2x1x128xf32>
    %23 = arith.divf %21, %22 : vector<2x1x128xf32>
    %24 = vector.broadcast %14 : vector<2x1x128xf32> to vector<2x2x128xf32>
    %25 = arith.subf %0, %24 : vector<2x2x128xf32>
    %26 = vector.broadcast %23 : vector<2x1x128xf32> to vector<2x2x128xf32>
    %27 = arith.mulf %25, %26 : vector<2x2x128xf32>
    %c0_9 = arith.constant 0 : index
    %c0_10 = arith.constant 0 : index
    %c0_11 = arith.constant 0 : index
    %28 = vector.load %arg5[%c0_9, %c0_10, %c0_11] : memref<2x2x128xf32, #tpu.memory_space<vmem>>, vector<2x2x128xf32>
    tpu.vector_store %arg5[%c0_9, %c0_10, %c0_11], %27 {strides = array<i32>} : memref<2x2x128xf32, #tpu.memory_space<vmem>>, vector<2x2x128xf32>,
    return
  }
  func.func @transform_0(%arg0: i32) -> (i32, i32, i32) {
    %c0_i32 = arith.constant 0 : i32
    %c0_i32_0 = arith.constant 0 : i32
    %c0_i32_1 = arith.constant 0 : i32
    return %arg0, %c0_i32, %c0_i32_0 : i32, i32, i32
  }
  func.func @transform_1(%arg0: i32) -> (i32, i32) {
    %c0_i32 = arith.constant 0 : i32
    %c0_i32_0 = arith.constant 0 : i32
    %c0_i32_1 = arith.constant 0 : i32
    return %c0_i32, %c0_i32_0 : i32, i32
  }
  func.func @transform_2(%arg0: i32) -> (i32, i32) {
    %c0_i32 = arith.constant 0 : i32
    %c0_i32_0 = arith.constant 0 : i32
    %c0_i32_1 = arith.constant 0 : i32
    return %c0_i32, %c0_i32_0 : i32, i32
  }
  func.func @transform_3(%arg0: i32) -> (i32, i32) {
    %c0_i32 = arith.constant 0 : i32
    %c0_i32_0 = arith.constant 0 : i32
    %c0_i32_1 = arith.constant 0 : i32
    return %c0_i32, %c0_i32_0 : i32, i32
  }
  func.func @transform_4(%arg0: i32) -> (i32, i32, i32) {
    %c0_i32 = arith.constant 0 : i32
    %c0_i32_0 = arith.constant 0 : i32
    %c0_i32_1 = arith.constant 0 : i32
    return %arg0, %c0_i32, %c0_i32_0 : i32, i32, i32
  }
}

</mosaic_0001>

<bundles_post_ra>
// kernel: tpu_custom_call.1
= control target key start
LH: loop header
LB: loop body
LE: loop exit
PB: predicated region body
PF: predicated region fallthrough
CT: control target
= control target key end

     0   :  { %9 = vsyncpa [#allocation3], 0  ;;  %s268_s0 = inlined_call_operand.hbm [shape: f32[2,2,128], index: 0, kind: input, shape index: {}]   ;;  %s269_s1 = inlined_call_operand.vmem [shape: f32[1,128], index: 1, kind: input, shape index: {}]   ;;  %s270_s2 = inlined_call_operand.vmem [shape: f32[1,128], index: 2, kind: input, shape index: {}]   ;;  %s271_s3 = inlined_call_operand.vmem [shape: f32[1,128], index: 3, kind: input, shape index: {}]   ;;  %s272_s4 = inlined_call_operand.hbm [shape: f32[2,2,128], index: 4, kind: output, shape index: {}]  }
   0x1   :  { %10 = vsyncpa [#allocation4], 0  ;;  %s198_s15 = smov [#allocation2]   ;;  %s150_s19 = scalar_lea.hbm %s268_s0, 64 }
   0x2   :  { %s16_s16 = sshll.u32 %s198_s15, 4  ;;  %p151_p0 = scmp.ne.s32.totalorder %s268_s0, %s150_s19  ;;  %s17_s16 = int_to_ptr.vmem [resolvable:$true] %s16_s16 }
   0x3   :  { %p154_p1 = scmp.lt.u32.totalorder %s150_s19, %s268_s0 }
   0x5   :  { %p156_p2 = pnand %p154_p1, %p151_p0 }
   0x7   :  { %159 = shalt.err (!%p156_p2)
}
   0x8   :  { %s160_s24 = scalar_lea.vmem %s17_s16, 64  ;;  %p165_p4 = scmp.lt.s32.totalorder %s17_s16, %s17_s16 }
   0x9   :  { %p161_p3 = scmp.ne.s32.totalorder %s17_s16, %s160_s24  ;;  %p166_p5 = scmp.lt.s32.totalorder %s160_s24, %s160_s24 }
   0xb   :  { %p167_p6 = por %p166_p5, %p165_p4 }
   0xd   :  { %p168_p7 = pnand %p167_p6, %p161_p3 }
   0xf   :  { %171 = shalt.err (!%p168_p7)
}
  0x10   :  { %s199_s25 = smov 32   ;;  %s200_s26 = smov 2  }
  0x11   :  { %22 = dma.hbm_to_vmem [thread:$0]  %s268_s0, 64, %s17_s16, [#allocation3], %s199_s25, %s199_s25, %s200_s26  }
  0x12   :  { %194 = dma.done.wait [#allocation3], 64  }
  0x13   :  { %195 = vsyncadd [#allocation3], 4294967232  ;;  %vm34_vm0 = vcmask 1041408   ;;  %v32_v0 = vld [vmem:[#allocation2] sm:$0x3]  ;;  %vm51_vm1 = vcmask 1041409   ;;  %v96_v35 = vlaneseq }
  0x14   :  { %v33_v1 = vld [vmem:[#allocation2 + $0x2] sm:$0x3]  ;;  %v35_v2 = vsel %vm34_vm0, %v32_v0, 0.0  ;;  %s201_s0 = smov 64   ;;  %v76_v23 = vld [vmem:[%s270_s2] sm:$0x1] }
  0x15   :  { %v42_v3 = vsel %vm34_vm0, %v33_v1, 0.0  ;;  %v36_v4 = vrot.slane %v35_v2, 4  ;;  %v77_v27 = vld [vmem:[%s271_s3] sm:$0x1]  ;;  %v97_v39 = vshrl.u32 %v96_v35, 7  ;;  %s202_s3 = smov [#allocation5]  }
  0x16   :  { %v43_v5 = vrot.slane %v42_v3, 4  ;;  %v75_v40 = vld [vmem:[%s269_s1] sm:$0x1]  ;;  %s123_s8 = sshll.u32 %s202_s3, 4  ;;  %s124_s8 = int_to_ptr.vmem [resolvable:$true] %s123_s8 }
  0x17   :  { %v37_v6 = vadd.f32 %v36_v4, %v35_v2  ;;  %v98_v42 = vsub.s32 0, %v97_v39  ;;  %s172_s1 = scalar_lea.vmem %s124_s8, 64  ;;  %p177_p9 = scmp.lt.s32.totalorder %s124_s8, %s124_s8 }
  0x18   :  { %v44_v7 = vadd.f32 %v43_v5, %v42_v3  ;;  %p173_p8 = scmp.ne.s32.totalorder %s124_s8, %s172_s1  ;;  %p178_p10 = scmp.lt.s32.totalorder %s172_s1, %s172_s1 }
  0x19   :  { %v38_v8 = vrot.slane %v37_v6, 2 }
  0x1a   :  { %v45_v9 = vrot.slane %v44_v7, 2  ;;  %p179_p11 = por %p178_p10, %p177_p9 }
  0x1b   :  { %v39_v10 = vadd.f32 %v38_v8, %v37_v6 }
  0x1c   :  { %v46_v11 = vadd.f32 %v45_v9, %v44_v7  ;;  %p180_p12 = pnand %p179_p11, %p173_p8 }
  0x1d   :  { %v40_v12 = vrot.slane %v39_v10, 1 }
  0x1e   :  { %v47_v13 = vrot.slane %v46_v11, 1 }
  0x1f   :  { %v41_v14 = vadd.f32 %v40_v12, %v39_v10 }
  0x20   :  { %v48_v15 = vadd.f32 %v47_v13, %v46_v11 }
  0x22   :  { %v52_v16 = vsel %vm51_vm1, %v48_v15, %v41_v14 }
  0x23   :  { %54 = vrot.lane.b32.xlu0 %v52_v16, %s199_s25 }
  0x95   :  { %v55_v17 = vpop.permute.xlu0 %54 }
  0x96   :  { %v57_v18 = vrot.slane %v55_v17, 1  ;;  %v60_v20 = vadd.f32 %v55_v17, %v41_v14 }
  0x98   :  { %v61_v19 = vadd.f32 %v57_v18, %v48_v15 }
  0x9a   :  { %v64_v21 = vrot.slane %v61_v19, 7 }
  0x9c   :  { %v65_v22 = vsel %vm51_vm1, %v64_v21, %v60_v20 }
  0x9d   :  { %67 = vrot.lane.b32.xlu0 %v65_v22, %s201_s0 }
 0x10f   :  { %v68_v24 = vpop.permute.xlu0 %67 }
 0x110   :  { %v70_v25 = vrot.slane %v68_v24, 1  ;;  %v73_v26 = vadd.f32 %v68_v24, %v60_v20 }
 0x112   :  { %v74_v28 = vadd.f32 %v70_v25, %v61_v19  ;;  %v80_v29 = vmul.f32 %v76_v23, %v73_v26  ;;  %v78_v43 = vmul.f32 %v75_v40, %v73_v26 }
 0x114   :  { %v81_v30 = vmul.f32 %v76_v23, %v74_v28  ;;  %v82_v31 = vadd.f32 %v80_v29, %v77_v27  ;;  %v79_v44 = vmul.f32 %v75_v40, %v74_v28  ;;  %v99_v45 = vrot.slane %v78_v43, %v98_v42 }
 0x116   :  { %v83_v32 = vadd.f32 %v81_v30, %v77_v27  ;;  %v135_v33 = vmul.f32 -1.442695, %v82_v31  ;;  %v103_v46 = vrot.slane %v79_v44, %v98_v42  ;;  %v104_v48 = vsub.f32 %v32_v0, %v99_v45 }
 0x118   :  { %142 = vpow2.f32 %v135_v33  ;;  %v136_v34 = vmul.f32 -1.442695, %v83_v32  ;;  %v105_v51 = vsub.f32 %v33_v1, %v103_v46 }
 0x11a   :  { %144 = vpow2.f32 %v136_v34 }
 0x122   :  { %v143_v36 = vpop.eup %142 }
 0x123   :  { %v90_v37 = vadd.f32 1.0, %v143_v36 }
 0x124   :  { %v145_v38 = vpop.eup %144 }
 0x125   :  { %v91_v41 = vadd.f32 1.0, %v145_v38  ;;  %146 = vrcp.f32 %v90_v37 }
 0x127   :  { %148 = vrcp.f32 %v91_v41 }
 0x12f   :  { %v147_v47 = vpop.eup %146 }
 0x130   :  { %v109_v49 = vrot.slane %v147_v47, %v98_v42 }
 0x131   :  { %v149_v50 = vpop.eup %148 }
 0x132   :  { %v113_v52 = vrot.slane %v149_v50, %v98_v42  ;;  %v114_v53 = vmul.f32 %v109_v49, %v104_v48 }
 0x134   :  { %v115_v54 = vmul.f32 %v113_v52, %v105_v51  ;;  %116 = vst [vmem:[#allocation5] sm:$0x3] %v114_v53 }
 0x136   :  { %117 = vst [vmem:[#allocation5 + $0x2] sm:$0x3] %v115_v54 }
 0x137   :  { %183 = shalt.err (!%p180_p12)
}
 0x138   :  { %s184_s11 = scalar_lea.hbm %s272_s4, 64 }
 0x139   :  { %p185_p13 = scmp.ne.s32.totalorder %s272_s4, %s184_s11  ;;  %p188_p0 = scmp.lt.u32.totalorder %s184_s11, %s272_s4 }
 0x13b   :  { %p190_p1 = pnand %p188_p0, %p185_p13 }
 0x13d   :  { %193 = shalt.err (!%p190_p1)
}
 0x13e   :  { %129 = dma.vmem_to_hbm [thread:$0]  %s124_s8, 64, %s272_s4, [#allocation4], %s199_s25, %s199_s25, %s200_s26  }
 0x13f   :  { %196 = dma.done.wait [#allocation4], 64  }
 0x140   :  { %197 = vsyncadd [#allocation4], 4294967232 }
 0x141   :  { %133 = vsyncpa [#allocation3], 1 }
 0x142   :  { %134 = vsyncpa [#allocation4], 1 }

</bundles_post_ra>
